<compile_context>
chip_gen: v5e
topology: v5e:2x2
jax: 0.10.0
libtpu: 0.0.40
codegen_flags: <defaults>
</compile_context>

<pallas_src>
import functools

import jax
import jax.numpy as jnp
from jax.experimental import pallas as pl
from jax.experimental.pallas import tpu as pltpu

MAX_LEN = 5000  # same semantics as the nn.Module: valid only for seq_len <= MAX_LEN
_VMEM_LIMIT_BYTES = 32 * 1024 * 1024


def _add_pe_kernel(x_ref, pe_ref, o_ref):
    # Streaming add; the 2-D PE block broadcasts over the leading batch-block dim.
    o_ref[...] = x_ref[...] + pe_ref[...]


@functools.lru_cache(maxsize=16)
def _pe_table(seq_len, embed_size, dtype_name):
    """Rows [0, seq_len) of the PyTorch positional-encoding buffer, in dtype_name."""
    pos = jnp.arange(seq_len, dtype=jnp.float32)[:, None]            # (S, 1)
    two_i = jnp.arange(0, embed_size, 2, dtype=jnp.float32)          # (E//2,)
    div = jnp.power(10000.0, two_i / float(embed_size))
    angle = pos / div                                                 # (S, E//2)
    pe = jnp.zeros((seq_len, embed_size), dtype=jnp.float32)
    pe = pe.at[:, 0::2].set(jnp.sin(angle))
    pe = pe.at[:, 1::2].set(jnp.cos(angle))
    return jax.device_put(pe.astype(dtype_name))


def _compiler_params(dims):
    return pltpu.CompilerParams(dimension_semantics=dims,
                                vmem_limit_bytes=_VMEM_LIMIT_BYTES)


def positional_encoding(x, *, block_bytes=4 << 20, pe_resident_max_bytes=4 << 20):
    """x: (B, S, E). Returns x + PE[:S, :] broadcast over batch (like the nn.Module)."""
    B, S, E = x.shape
    if S > MAX_LEN:
        raise ValueError(f"seq_len={S} exceeds max_len={MAX_LEN}")
    if E % 2 != 0:
        raise ValueError("embed_size must be even (same constraint as the PyTorch module)")

    dtype = x.dtype
    itemsize = jnp.dtype(dtype).itemsize
    pe = _pe_table(S, E, jnp.dtype(dtype).name)          # (S, E), cached across calls

    # ---- choose a lane-dense per-batch 2-D layout (R, C) ------------------------
    if E % 128 == 0:
        R, C = S, E                                       # already lane-dense
        x2, pe2 = x, pe
    elif (S * E) % 128 == 0:
        R, C = (S * E) // 128, 128                        # fold to full (8,128) tiles
        x2, pe2 = x.reshape(B, R, C), pe.reshape(R, C)
    else:
        # TODO(synk): ragged S*E (not a multiple of 128) falls back to a 1-sublane
        # slab; fine for small tables, wasteful if S*E is huge.
        R, C = 1, S * E
        x2, pe2 = x.reshape(B, R, C), pe.reshape(R, C)

    pe_bytes = R * C * itemsize
    ragged = (C % 128 != 0)

    if ragged or pe_bytes <= pe_resident_max_bytes:
        # Whole PE table resident in VMEM (constant index_map => DMA'd exactly once);
        # grid tiles the batch axis so each step still moves a ~block_bytes slab.
        bt = int(max(1, min(B, block_bytes // max(pe_bytes, 1))))
        grid = (pl.cdiv(B, bt),)
        out2 = pl.pallas_call(
            _add_pe_kernel,
            out_shape=jax.ShapeDtypeStruct((B, R, C), dtype),
            grid_spec=pltpu.PrefetchScalarGridSpec(
                num_scalar_prefetch=0,
                grid=grid,
                in_specs=[
                    pl.BlockSpec((bt, R, C), lambda i: (i, 0, 0)),
                    pl.BlockSpec((R, C), lambda i: (0, 0)),        # PE resident
                ],
                out_specs=pl.BlockSpec((bt, R, C), lambda i: (i, 0, 0)),
            ),
            compiler_params=_compiler_params(("parallel",)),
        )(x2, pe2)
    else:
        # Large PE: tile rows; batch is the innermost grid axis and the PE index_map
        # ignores it, so each PE block is DMA'd once and reused for all B steps.
        row_bytes = C * itemsize
        tr = int(max(8, (block_bytes // row_bytes // 8) * 8))
        if tr >= R:
            tr = R
        grid = (pl.cdiv(R, tr), B)
        out2 = pl.pallas_call(
            _add_pe_kernel,
            out_shape=jax.ShapeDtypeStruct((B, R, C), dtype),
            grid_spec=pltpu.PrefetchScalarGridSpec(
                num_scalar_prefetch=0,
                grid=grid,
                in_specs=[
                    pl.BlockSpec((1, tr, C), lambda r, b: (b, r, 0)),
                    pl.BlockSpec((tr, C), lambda r, b: (r, 0)),    # depends on r only
                ],
                out_specs=pl.BlockSpec((1, tr, C), lambda r, b: (b, r, 0)),
            ),
            compiler_params=_compiler_params(("parallel", "arbitrary")),
        )(x2, pe2)

    return out2.reshape(B, S, E)


def _reference(x):
    # Pure-JAX reproduction of the PyTorch buffer construction + forward.
    B, S, E = x.shape
    pos = jnp.arange(MAX_LEN, dtype=jnp.float32)[:, None]
    _2i = jnp.arange(0, E, 2, dtype=jnp.float32)
    enc = jnp.zeros((MAX_LEN, E), dtype=jnp.float32)
    enc = enc.at[:, 0::2].set(jnp.sin(pos / 10000.0 ** (_2i / E)))
    enc = enc.at[:, 1::2].set(jnp.cos(pos / 10000.0 ** (_2i / E)))
    return x + enc[:S, :][None, :, :]


if __name__ == "__main__":
    key = jax.random.PRNGKey(0)

    # Case 1: small E (folds (S, E) -> (S*E/128, 128); whole PE resident, batch-tiled).
    B, S, E = 2, 8, 32
    x = jax.random.normal(key, (B, S, E), dtype=jnp.float32)
    out = jax.block_until_ready(positional_encoding(x))
    assert out.shape == (B, S, E)
    assert jnp.allclose(out, _reference(x), atol=1e-5, rtol=1e-5)

    # Case 2: lane-dense E, whole PE resident, batch-tiled.
    x2 = jax.random.normal(jax.random.PRNGKey(1), (2, 16, 128), dtype=jnp.float32)
    out2 = jax.block_until_ready(positional_encoding(x2))
    assert out2.shape == (2, 16, 128)
    assert jnp.allclose(out2, _reference(x2), atol=1e-5, rtol=1e-5)

    # Case 3: force the row-tiled (PE block resident across the batch sweep) path
    # on a small shape by shrinking the thresholds.
    x3 = jax.random.normal(jax.random.PRNGKey(2), (2, 64, 256), dtype=jnp.float32)
    out3 = jax.block_until_ready(
        positional_encoding(x3, block_bytes=8 * 256 * 4, pe_resident_max_bytes=0))
    assert out3.shape == (2, 64, 256)
    assert jnp.allclose(out3, _reference(x3), atol=1e-5, rtol=1e-5)

    # Case 4: bf16 input (PE stored in bf16, add runs in bf16 inside the kernel).
    x4 = jax.random.normal(jax.random.PRNGKey(3), (2, 16, 128), dtype=jnp.bfloat16)
    out4 = jax.block_until_ready(positional_encoding(x4))
    assert out4.dtype == jnp.bfloat16
    assert jnp.allclose(out4.astype(jnp.float32),
                        _reference(x4.astype(jnp.float32)), atol=5e-2, rtol=5e-2)

    print("KERNEL_OK")
</pallas_src>

<mosaic_0001>
module attributes {stable_mosaic.version = 11 : i64} {
  func.func @_add_pe_kernel(%arg0: i32, %arg1: memref<2x2x128xf32, #tpu.memory_space<vmem>>, %arg2: memref<2x128xf32, #tpu.memory_space<vmem>>, %arg3: memref<2x2x128xf32, #tpu.memory_space<vmem>>) attributes {dimension_semantics = [#tpu.dimension_semantics<parallel>], iteration_bounds = array<i64: 1>, scalar_prefetch = 0 : i64, scratch_operands = 0 : i64, tpu.core_type = #tpu.core_type<tc>, window_params = [{transform_indices = @transform_0, window_bounds = array<i64: 2, 2, 128>}, {pipeline_mode = #tpu.pipeline_mode<synchronous>, transform_indices = @transform_1, window_bounds = array<i64: 2, 128>}, {transform_indices = @transform_2, window_bounds = array<i64: 2, 2, 128>}]} {
    %c0 = arith.constant 0 : index
    %c0_0 = arith.constant 0 : index
    %c0_1 = arith.constant 0 : index
    %0 = vector.load %arg1[%c0, %c0_0, %c0_1] : memref<2x2x128xf32, #tpu.memory_space<vmem>>, vector<2x2x128xf32>
    %c0_2 = arith.constant 0 : index
    %c0_3 = arith.constant 0 : index
    %1 = vector.load %arg2[%c0_2, %c0_3] : memref<2x128xf32, #tpu.memory_space<vmem>>, vector<2x128xf32>
    %2 = vector.shape_cast %1 : vector<2x128xf32> to vector<1x2x128xf32>
    %3 = vector.broadcast %2 : vector<1x2x128xf32> to vector<2x2x128xf32>
    %4 = arith.addf %0, %3 : vector<2x2x128xf32>
    %c0_4 = arith.constant 0 : index
    %c0_5 = arith.constant 0 : index
    %c0_6 = arith.constant 0 : index
    %5 = vector.load %arg3[%c0_4, %c0_5, %c0_6] : memref<2x2x128xf32, #tpu.memory_space<vmem>>, vector<2x2x128xf32>
    tpu.vector_store %arg3[%c0_4, %c0_5, %c0_6], %4 {strides = array<i32>} : memref<2x2x128xf32, #tpu.memory_space<vmem>>, vector<2x2x128xf32>,
    return
  }
  func.func @transform_0(%arg0: i32) -> (i32, i32, i32) {
    %c0_i32 = arith.constant 0 : i32
    %c0_i32_0 = arith.constant 0 : i32
    %c0_i32_1 = arith.constant 0 : i32
    return %arg0, %c0_i32, %c0_i32_0 : i32, i32, i32
  }
  func.func @transform_1(%arg0: i32) -> (i32, i32) {
    %c0_i32 = arith.constant 0 : i32
    %c0_i32_0 = arith.constant 0 : i32
    %c0_i32_1 = arith.constant 0 : i32
    return %c0_i32, %c0_i32_0 : i32, i32
  }
  func.func @transform_2(%arg0: i32) -> (i32, i32, i32) {
    %c0_i32 = arith.constant 0 : i32
    %c0_i32_0 = arith.constant 0 : i32
    %c0_i32_1 = arith.constant 0 : i32
    return %arg0, %c0_i32, %c0_i32_0 : i32, i32, i32
  }
}

</mosaic_0001>

<bundles_post_ra>
// kernel: tpu_custom_call.1
= control target key start
LH: loop header
LB: loop body
LE: loop exit
PB: predicated region body
PF: predicated region fallthrough
CT: control target
= control target key end

     0   :  { %7 = vsyncpa [#allocation3], 0  ;;  %s181_s0 = inlined_call_operand.hbm [shape: f32[2,2,128], index: 0, kind: input, shape index: {}]   ;;  %s182_s1 = inlined_call_operand.hbm [shape: f32[2,128], index: 1, kind: input, shape index: {}]   ;;  %s183_s2 = inlined_call_operand.hbm [shape: f32[2,2,128], index: 2, kind: output, shape index: {}]  }
   0x1   :  { %8 = vsyncpa [#allocation6], 0 }
   0x2   :  { %9 = vsyncpa [#allocation4], 0  ;;  %s14_s11 = sshll.u32 %s181_s0, 4  ;;  %s152_s12 = smov [#allocation2]   ;;  %s15_s11 = int_to_ptr.hbm [resolvable:$true] %s14_s11 }
   0x3   :  { %s16_s13 = sshll.u32 %s152_s12, 4  ;;  %s28_s16 = sshll.u32 %s182_s1, 4  ;;  %s17_s13 = int_to_ptr.vmem [resolvable:$true] %s16_s13  ;;  %s29_s16 = int_to_ptr.hbm [resolvable:$true] %s28_s16 }
   0x4   :  { %s153_s17 = smov 32   ;;  %s154_s18 = smov 2  }
   0x5   :  { %22 = dma.hbm_to_vmem [thread:$0]  %s15_s11, 64, %s17_s13, [#allocation3], %s153_s17, %s153_s17, %s154_s18  }
   0x6   :  { %s155_s19 = smov [#allocation5]  }
   0x7   :  { %s30_s20 = sshll.u32 %s155_s19, 4  ;;  %s31_s20 = int_to_ptr.vmem [resolvable:$true] %s30_s20 }
   0x8   :  { %33 = dma.hbm_to_vmem [thread:$0]  %s29_s16, 32, %s31_s20, [#allocation6]  }
   0x9   :  { %146 = dma.done.wait [#allocation3], 64  }
   0xa   :  { %147 = vsyncadd [#allocation3], 4294967232 }
   0xb   :  { %148 = dma.done.wait [#allocation6], 32  }
   0xc   :  { %149 = vsyncadd [#allocation6], 4294967264  ;;  %s156_s0 = smov [#allocation7]   ;;  %s55_s24 = sshll.u32 %s183_s2, 4  ;;  %v42_v0 = vld [vmem:[#allocation2] sm:$0x3]  ;;  %s56_s24 = int_to_ptr.hbm [resolvable:$true] %s55_s24 }
   0xd   :  { %s53_s21 = sshll.u32 %s156_s0, 4  ;;  %v44_v1 = vld [vmem:[#allocation5] sm:$0x3]  ;;  %v43_v2 = vld [vmem:[#allocation2 + $0x2] sm:$0x3]  ;;  %s54_s21 = int_to_ptr.vmem [resolvable:$true] %s53_s21 }
   0xe   :  { %v45_v3 = vadd.f32 %v44_v1, %v42_v0  ;;  %v46_v4 = vadd.f32 %v44_v1, %v43_v2 }
  0x10   :  { %47 = vst [vmem:[#allocation7] sm:$0x3] %v45_v3 }
  0x11   :  { %48 = vst [vmem:[#allocation7 + $0x2] sm:$0x3] %v46_v4 }
  0x12   :  { %61 = dma.vmem_to_hbm [thread:$0]  %s54_s21, 64, %s56_s24, [#allocation4], %s153_s17, %s153_s17, %s154_s18  }
  0x13   :  { %150 = dma.done.wait [#allocation4], 64  }
  0x14   :  { %151 = vsyncadd [#allocation4], 4294967232 }
  0x15   :  { %66 = vsyncpa [#allocation3], 1 }
  0x16   :  { %67 = vsyncpa [#allocation6], 1 }
  0x17   :  { %68 = vsyncpa [#allocation4], 1 }

</bundles_post_ra>
